<compile_context>
chip_gen: v6e
topology: v6e:2x2x1
jax: 0.10.0
libtpu: 0.0.40
codegen_flags: <defaults>
</compile_context>

<pallas_src>
import jax
import jax.numpy as jnp
from jax.experimental import pallas as pl
from jax.experimental.pallas import tpu as pltpu


# --- Model configuration (mirrors Net(n_inputs, n_outputs) defaults) ---
N_INPUTS = 752                                   # raw 1-D signal length
N_OUTPUTS = 5                                    # number of classes
TRIM_EDGES = 120                                 # nn.ConstantPad1d(-trim_edges, 0)
POOL_K, POOL_S, POOL_P = 4, 4, 0                 # avg_pool=(4, 4, 0)
HIDDEN_1, HIDDEN_2 = 140, 110                    # hidden_3 = 0 -> fc3 is the output layer

N_CENTER = N_INPUTS - 2 * TRIM_EDGES                            # 512 = 4 * 128 (lane aligned)
N_POOL_OUT = (N_CENTER + 2 * POOL_P - POOL_K) // POOL_S + 1     # 128

LANE = 128
H1_PAD = ((HIDDEN_1 + LANE - 1) // LANE) * LANE                 # 256
H2_PAD = ((HIDDEN_2 + LANE - 1) // LANE) * LANE                 # 128
OUT_PAD = ((N_OUTPUTS + LANE - 1) // LANE) * LANE               # 128
NEG_BIAS = -1e30          # bias for padded logit lanes: exp underflows to exactly 0

MAX_TILE_B = 512          # rows per grid step; whole working set stays well under VMEM


def _erf_f32(x):
    # Abramowitz & Stegun 7.1.26 (max abs err ~1.5e-7, i.e. float32 precision).
    # Used instead of lax.erf since erf_p has no guaranteed Pallas-TPU lowering.
    a1, a2, a3, a4, a5 = 0.254829592, -0.284496736, 1.421413741, -1.453152027, 1.061405429
    p = 0.3275911
    ax = jnp.abs(x)
    t = 1.0 / (1.0 + p * ax)          # exact f32 divide (keeps f32 parity with PyTorch)
    poly = ((((a5 * t + a4) * t + a3) * t + a2) * t + a1) * t
    y = 1.0 - poly * jnp.exp(-ax * ax)
    return jnp.where(x < 0.0, -y, y)


def _gelu_exact(x):
    # F.gelu default (approximate='none'): 0.5 * x * (1 + erf(x / sqrt(2)))
    return 0.5 * x * (1.0 + _erf_f32(x * jnp.float32(0.7071067811865476)))


def net_kernel(x_ref, w1_ref, b1_ref, w2_ref, b2_ref, w3_ref, b3_ref, o_ref):
    # ConstantPad1d(-120, 0): static in-kernel slice -> lane-aligned (tile_b, 512) block.
    xt = x_ref[:, pl.ds(TRIM_EDGES, N_CENTER)]
    # fc1 + gelu  (AvgPool1d is folded into w1_ref at parameter-prep time).
    h1 = _gelu_exact(
        jnp.dot(xt, w1_ref[...], preferred_element_type=jnp.float32) + b1_ref[...])
    # fc2 + gelu  (nn.Dropout is identity in eval mode; with_batch_norm=False).
    h2 = _gelu_exact(
        jnp.dot(h1, w2_ref[...], preferred_element_type=jnp.float32) + b2_ref[...])
    # fc3 (output layer; hidden_3 == 0 so fc4 is None). Padded output lanes carry a
    # -1e30 bias so they contribute exp(..)=0 to the log-softmax normalizer.
    logits = jnp.dot(h2, w3_ref[...], preferred_element_type=jnp.float32) + b3_ref[...]

    # log_softmax over dim=1 (class axis = last axis of the 2-D output).
    m = jnp.max(logits, axis=-1, keepdims=True)
    shifted = logits - m
    lse = jnp.log(jnp.sum(jnp.exp(shifted), axis=-1, keepdims=True))
    o_ref[...] = shifted - lse


def init_params(key):
    # PyTorch nn.Linear default init: U(-1/sqrt(fan_in), 1/sqrt(fan_in)) for W and b.
    # Weights stored pre-transposed as (in, out); biases as (1, out).
    def linear(k, fan_in, fan_out):
        kw, kb = jax.random.split(k)
        bound = 1.0 / float(fan_in) ** 0.5
        w = jax.random.uniform(kw, (fan_in, fan_out), jnp.float32, -bound, bound)
        b = jax.random.uniform(kb, (1, fan_out), jnp.float32, -bound, bound)
        return w, b

    k1, k2, k3 = jax.random.split(key, 3)
    w1, b1 = linear(k1, N_POOL_OUT, HIDDEN_1)
    w2, b2 = linear(k2, HIDDEN_1, HIDDEN_2)
    w3, b3 = linear(k3, HIDDEN_2, N_OUTPUTS)
    return w1, b1, w2, b2, w3, b3


def fuse_params(params):
    """One-time parameter prep (zero runtime cost on the forward path).

    * Fold AvgPool1d(4,4,0) into fc1:  pool(x) @ W1 == x @ (P_pool @ W1).
    * Lane-align every layer width to a multiple of 128 with zero rows/cols so all
      matmul K/N dims are lane-dense (no masked vregs / relayouts, unmasked output vst).
      Padded hidden activations are gelu(0)=0 and padded weight rows are zero, so the
      real outputs are exact. Padded logit lanes get a -1e30 bias (excluded from softmax).
    """
    w1, b1, w2, b2, w3, b3 = params
    pool_mat = jnp.repeat(jnp.eye(N_POOL_OUT, dtype=jnp.float32), POOL_K, axis=0) / POOL_K
    w1f = pool_mat @ w1                                           # (512, 140)

    w1p = jnp.zeros((N_CENTER, H1_PAD), jnp.float32).at[:, :HIDDEN_1].set(w1f)
    b1p = jnp.zeros((1, H1_PAD), jnp.float32).at[:, :HIDDEN_1].set(b1)
    w2p = jnp.zeros((H1_PAD, H2_PAD), jnp.float32).at[:HIDDEN_1, :HIDDEN_2].set(w2)
    b2p = jnp.zeros((1, H2_PAD), jnp.float32).at[:, :HIDDEN_2].set(b2)
    w3p = jnp.zeros((H2_PAD, OUT_PAD), jnp.float32).at[:HIDDEN_2, :N_OUTPUTS].set(w3)
    b3p = jnp.full((1, OUT_PAD), NEG_BIAS, jnp.float32).at[:, :N_OUTPUTS].set(b3)
    return w1p, b1p, w2p, b2p, w3p, b3p


@jax.jit
def net_forward(x, fused_params):
    w1f, b1, w2, b2, w3, b3 = fused_params
    b = x.shape[0]

    # Batch tiling: one grid step per TILE_B rows; weights stay VMEM-resident across
    # steps (constant index_map). Small batches (b <= MAX_TILE_B) run as a single tile
    # with whole-dim blocks -> no padding, no extra wrapper HLOs on the latency path.
    tile_b = min(b, MAX_TILE_B)
    n_tiles = -(-b // tile_b)
    b_pad = n_tiles * tile_b
    if b_pad != b:
        x = jnp.pad(x, ((0, b_pad - b), (0, 0)))

    const = lambda i: (0, 0)
    out = pl.pallas_call(
        net_kernel,
        out_shape=jax.ShapeDtypeStruct((b_pad, OUT_PAD), jnp.float32),
        grid=(n_tiles,),
        in_specs=[
            pl.BlockSpec((tile_b, N_INPUTS), lambda i: (i, 0)),   # x rows, tiled
            pl.BlockSpec((N_CENTER, H1_PAD), const),              # weights: resident
            pl.BlockSpec((1, H1_PAD), const),
            pl.BlockSpec((H1_PAD, H2_PAD), const),
            pl.BlockSpec((1, H2_PAD), const),
            pl.BlockSpec((H2_PAD, OUT_PAD), const),
            pl.BlockSpec((1, OUT_PAD), const),
        ],
        out_specs=pl.BlockSpec((tile_b, OUT_PAD), lambda i: (i, 0)),
        compiler_params=pltpu.CompilerParams(
            dimension_semantics=("parallel",)),                   # both v7x TensorCores
    )(x, w1f, b1, w2, b2, w3, b3)

    # Real classes are the first 5 lanes; padded rows (if any) are dropped.
    return out[:b, :N_OUTPUTS]


def reference_forward(x, params):
    # Pure-JAX reference of the PyTorch forward (eval mode) for correctness checking.
    w1, b1, w2, b2, w3, b3 = params
    xt = x[:, TRIM_EDGES:N_INPUTS - TRIM_EDGES]
    xp = jnp.mean(xt.reshape(x.shape[0], N_POOL_OUT, POOL_K), axis=-1)
    gelu = lambda v: 0.5 * v * (1.0 + jax.lax.erf(v * jnp.float32(0.7071067811865476)))
    h1 = gelu(xp @ w1 + b1)
    h2 = gelu(h1 @ w2 + b2)
    logits = h2 @ w3 + b3
    return jax.nn.log_softmax(logits, axis=-1)


if __name__ == "__main__":
    key = jax.random.PRNGKey(0)
    kx, kp, kx2 = jax.random.split(key, 3)
    params = init_params(kp)
    fused = fuse_params(params)

    # Small-batch latency path: single tile, no wrapper pad/slice of the input.
    x_small = jax.random.normal(kx, (4, N_INPUTS), dtype=jnp.float32)
    out_small = net_forward(x_small, fused)
    jax.block_until_ready(out_small)
    assert out_small.shape == (4, N_OUTPUTS)
    assert bool(jnp.allclose(jnp.sum(jnp.exp(out_small), axis=-1), 1.0, atol=1e-5))
    assert bool(jnp.allclose(out_small, reference_forward(x_small, params),
                             atol=1e-4, rtol=1e-4))

    # Large-batch throughput path: multi-step batch grid with VMEM-resident weights.
    x_large = jax.random.normal(kx2, (1000, N_INPUTS), dtype=jnp.float32)
    out_large = net_forward(x_large, fused)
    jax.block_until_ready(out_large)
    assert out_large.shape == (1000, N_OUTPUTS)
    assert bool(jnp.allclose(jnp.sum(jnp.exp(out_large), axis=-1), 1.0, atol=1e-5))
    assert bool(jnp.allclose(out_large, reference_forward(x_large, params),
                             atol=1e-4, rtol=1e-4))

    print("KERNEL_OK")
</pallas_src>

<mosaic_0001>
module attributes {stable_mosaic.version = 11 : i64} {
  func.func @net_kernel(%arg0: i32, %arg1: memref<4x752xf32, #tpu.memory_space<vmem>>, %arg2: memref<512x256xf32, #tpu.memory_space<vmem>>, %arg3: memref<1x256xf32, #tpu.memory_space<vmem>>, %arg4: memref<256x128xf32, #tpu.memory_space<vmem>>, %arg5: memref<1x128xf32, #tpu.memory_space<vmem>>, %arg6: memref<128x128xf32, #tpu.memory_space<vmem>>, %arg7: memref<1x128xf32, #tpu.memory_space<vmem>>, %arg8: memref<4x128xf32, #tpu.memory_space<vmem>>) attributes {dimension_semantics = [#tpu.dimension_semantics<parallel>], iteration_bounds = array<i64: 1>, scalar_prefetch = 0 : i64, scratch_operands = 0 : i64, tpu.core_type = #tpu.core_type<tc>, window_params = [{transform_indices = @transform_0, window_bounds = array<i64: 4, 752>}, {pipeline_mode = #tpu.pipeline_mode<synchronous>, transform_indices = @transform_1, window_bounds = array<i64: 512, 256>}, {pipeline_mode = #tpu.pipeline_mode<synchronous>, transform_indices = @transform_2, window_bounds = array<i64: 1, 256>}, {pipeline_mode = #tpu.pipeline_mode<synchronous>, transform_indices = @transform_3, window_bounds = array<i64: 256, 128>}, {pipeline_mode = #tpu.pipeline_mode<synchronous>, transform_indices = @transform_4, window_bounds = array<i64: 1, 128>}, {pipeline_mode = #tpu.pipeline_mode<synchronous>, transform_indices = @transform_5, window_bounds = array<i64: 128, 128>}, {pipeline_mode = #tpu.pipeline_mode<synchronous>, transform_indices = @transform_6, window_bounds = array<i64: 1, 128>}, {transform_indices = @transform_7, window_bounds = array<i64: 4, 128>}]} {
    %c0 = arith.constant 0 : index
    %c120 = arith.constant 120 : index
    %0 = vector.load %arg1[%c0, %c120] : memref<4x752xf32, #tpu.memory_space<vmem>>, vector<4x512xf32>
    %c0_0 = arith.constant 0 : index
    %c0_1 = arith.constant 0 : index
    %1 = vector.load %arg2[%c0_0, %c0_1] : memref<512x256xf32, #tpu.memory_space<vmem>>, vector<512x256xf32>
    %cst = arith.constant dense<0.000000e+00> : vector<4x256xf32>
    %2 = tpu.matmul %0, %1, %cst {dimension_numbers = #tpu.dot_dimension_numbers<[1], [0], [0], [1], [0, 0, 1, 1], [], []>} : vector<4x512xf32>, vector<512x256xf32>, vector<4x256xf32> -> vector<4x256xf32>
    %c0_2 = arith.constant 0 : index
    %c0_3 = arith.constant 0 : index
    %3 = vector.load %arg3[%c0_2, %c0_3] : memref<1x256xf32, #tpu.memory_space<vmem>>, vector<1x256xf32>
    %4 = vector.broadcast %3 : vector<1x256xf32> to vector<4x256xf32>
    %5 = arith.addf %2, %4 : vector<4x256xf32>
    %cst_4 = arith.constant 5.000000e-01 : f32
    %6 = vector.broadcast %cst_4 : f32 to vector<4x256xf32>
    %7 = arith.mulf %6, %5 : vector<4x256xf32>
    %cst_5 = arith.constant 0.707106769 : f32
    %8 = vector.broadcast %cst_5 : f32 to vector<4x256xf32>
    %9 = arith.mulf %5, %8 : vector<4x256xf32>
    %10 = math.absf %9 : vector<4x256xf32>
    %cst_6 = arith.constant 0.327591091 : f32
    %11 = vector.broadcast %cst_6 : f32 to vector<4x256xf32>
    %12 = arith.mulf %11, %10 : vector<4x256xf32>
    %cst_7 = arith.constant 1.000000e+00 : f32
    %13 = vector.broadcast %cst_7 : f32 to vector<4x256xf32>
    %14 = arith.addf %13, %12 : vector<4x256xf32>
    %cst_8 = arith.constant 1.000000e+00 : f32
    %15 = vector.broadcast %cst_8 : f32 to vector<4x256xf32>
    %16 = arith.divf %15, %14 : vector<4x256xf32>
    %cst_9 = arith.constant 1.06140542 : f32
    %17 = vector.broadcast %cst_9 : f32 to vector<4x256xf32>
    %18 = arith.mulf %17, %16 : vector<4x256xf32>
    %cst_10 = arith.constant -1.45315206 : f32
    %19 = vector.broadcast %cst_10 : f32 to vector<4x256xf32>
    %20 = arith.addf %18, %19 : vector<4x256xf32>
    %21 = arith.mulf %20, %16 : vector<4x256xf32>
    %cst_11 = arith.constant 1.42141378 : f32
    %22 = vector.broadcast %cst_11 : f32 to vector<4x256xf32>
    %23 = arith.addf %21, %22 : vector<4x256xf32>
    %24 = arith.mulf %23, %16 : vector<4x256xf32>
    %cst_12 = arith.constant -0.284496725 : f32
    %25 = vector.broadcast %cst_12 : f32 to vector<4x256xf32>
    %26 = arith.addf %24, %25 : vector<4x256xf32>
    %27 = arith.mulf %26, %16 : vector<4x256xf32>
    %cst_13 = arith.constant 0.254829586 : f32
    %28 = vector.broadcast %cst_13 : f32 to vector<4x256xf32>
    %29 = arith.addf %27, %28 : vector<4x256xf32>
    %30 = arith.mulf %29, %16 : vector<4x256xf32>
    %cst_14 = arith.constant 0.000000e+00 : f32
    %31 = vector.broadcast %cst_14 : f32 to vector<4x256xf32>
    %32 = arith.subf %31, %10 : vector<4x256xf32>
    %33 = arith.mulf %32, %10 : vector<4x256xf32>
    %34 = math.exp %33 : vector<4x256xf32>
    %35 = arith.mulf %30, %34 : vector<4x256xf32>
    %cst_15 = arith.constant 1.000000e+00 : f32
    %36 = vector.broadcast %cst_15 : f32 to vector<4x256xf32>
    %37 = arith.subf %36, %35 : vector<4x256xf32>
    %cst_16 = arith.constant 0.000000e+00 : f32
    %38 = vector.broadcast %cst_16 : f32 to vector<4x256xf32>
    %39 = arith.cmpf olt, %9, %38 : vector<4x256xf32>
    %cst_17 = arith.constant 0.000000e+00 : f32
    %40 = vector.broadcast %cst_17 : f32 to vector<4x256xf32>
    %41 = arith.subf %40, %37 : vector<4x256xf32>
    %42 = arith.select %39, %41, %37 : vector<4x256xi1>, vector<4x256xf32>
    %cst_18 = arith.constant 1.000000e+00 : f32
    %43 = vector.broadcast %cst_18 : f32 to vector<4x256xf32>
    %44 = arith.addf %43, %42 : vector<4x256xf32>
    %45 = arith.mulf %7, %44 : vector<4x256xf32>
    %c0_19 = arith.constant 0 : index
    %c0_20 = arith.constant 0 : index
    %46 = vector.load %arg4[%c0_19, %c0_20] : memref<256x128xf32, #tpu.memory_space<vmem>>, vector<256x128xf32>
    %cst_21 = arith.constant dense<0.000000e+00> : vector<4x128xf32>
    %47 = tpu.matmul %45, %46, %cst_21 {dimension_numbers = #tpu.dot_dimension_numbers<[1], [0], [0], [1], [0, 0, 1, 1], [], []>} : vector<4x256xf32>, vector<256x128xf32>, vector<4x128xf32> -> vector<4x128xf32>
    %c0_22 = arith.constant 0 : index
    %c0_23 = arith.constant 0 : index
    %48 = vector.load %arg5[%c0_22, %c0_23] : memref<1x128xf32, #tpu.memory_space<vmem>>, vector<1x128xf32>
    %49 = vector.broadcast %48 : vector<1x128xf32> to vector<4x128xf32>
    %50 = arith.addf %47, %49 : vector<4x128xf32>
    %cst_24 = arith.constant 5.000000e-01 : f32
    %51 = vector.broadcast %cst_24 : f32 to vector<4x128xf32>
    %52 = arith.mulf %51, %50 : vector<4x128xf32>
    %cst_25 = arith.constant 0.707106769 : f32
    %53 = vector.broadcast %cst_25 : f32 to vector<4x128xf32>
    %54 = arith.mulf %50, %53 : vector<4x128xf32>
    %55 = math.absf %54 : vector<4x128xf32>
    %cst_26 = arith.constant 0.327591091 : f32
    %56 = vector.broadcast %cst_26 : f32 to vector<4x128xf32>
    %57 = arith.mulf %56, %55 : vector<4x128xf32>
    %cst_27 = arith.constant 1.000000e+00 : f32
    %58 = vector.broadcast %cst_27 : f32 to vector<4x128xf32>
    %59 = arith.addf %58, %57 : vector<4x128xf32>
    %cst_28 = arith.constant 1.000000e+00 : f32
    %60 = vector.broadcast %cst_28 : f32 to vector<4x128xf32>
    %61 = arith.divf %60, %59 : vector<4x128xf32>
    %cst_29 = arith.constant 1.06140542 : f32
    %62 = vector.broadcast %cst_29 : f32 to vector<4x128xf32>
    %63 = arith.mulf %62, %61 : vector<4x128xf32>
    %cst_30 = arith.constant -1.45315206 : f32
    %64 = vector.broadcast %cst_30 : f32 to vector<4x128xf32>
    %65 = arith.addf %63, %64 : vector<4x128xf32>
    %66 = arith.mulf %65, %61 : vector<4x128xf32>
    %cst_31 = arith.constant 1.42141378 : f32
    %67 = vector.broadcast %cst_31 : f32 to vector<4x128xf32>
    %68 = arith.addf %66, %67 : vector<4x128xf32>
    %69 = arith.mulf %68, %61 : vector<4x128xf32>
    %cst_32 = arith.constant -0.284496725 : f32
    %70 = vector.broadcast %cst_32 : f32 to vector<4x128xf32>
    %71 = arith.addf %69, %70 : vector<4x128xf32>
    %72 = arith.mulf %71, %61 : vector<4x128xf32>
    %cst_33 = arith.constant 0.254829586 : f32
    %73 = vector.broadcast %cst_33 : f32 to vector<4x128xf32>
    %74 = arith.addf %72, %73 : vector<4x128xf32>
    %75 = arith.mulf %74, %61 : vector<4x128xf32>
    %cst_34 = arith.constant 0.000000e+00 : f32
    %76 = vector.broadcast %cst_34 : f32 to vector<4x128xf32>
    %77 = arith.subf %76, %55 : vector<4x128xf32>
    %78 = arith.mulf %77, %55 : vector<4x128xf32>
    %79 = math.exp %78 : vector<4x128xf32>
    %80 = arith.mulf %75, %79 : vector<4x128xf32>
    %cst_35 = arith.constant 1.000000e+00 : f32
    %81 = vector.broadcast %cst_35 : f32 to vector<4x128xf32>
    %82 = arith.subf %81, %80 : vector<4x128xf32>
    %cst_36 = arith.constant 0.000000e+00 : f32
    %83 = vector.broadcast %cst_36 : f32 to vector<4x128xf32>
    %84 = arith.cmpf olt, %54, %83 : vector<4x128xf32>
    %cst_37 = arith.constant 0.000000e+00 : f32
    %85 = vector.broadcast %cst_37 : f32 to vector<4x128xf32>
    %86 = arith.subf %85, %82 : vector<4x128xf32>
    %87 = arith.select %84, %86, %82 : vector<4x128xi1>, vector<4x128xf32>
    %cst_38 = arith.constant 1.000000e+00 : f32
    %88 = vector.broadcast %cst_38 : f32 to vector<4x128xf32>
    %89 = arith.addf %88, %87 : vector<4x128xf32>
    %90 = arith.mulf %52, %89 : vector<4x128xf32>
    %c0_39 = arith.constant 0 : index
    %c0_40 = arith.constant 0 : index
    %91 = vector.load %arg6[%c0_39, %c0_40] : memref<128x128xf32, #tpu.memory_space<vmem>>, vector<128x128xf32>
    %cst_41 = arith.constant dense<0.000000e+00> : vector<4x128xf32>
    %92 = tpu.matmul %90, %91, %cst_41 {dimension_numbers = #tpu.dot_dimension_numbers<[1], [0], [0], [1], [0, 0, 1, 1], [], []>} : vector<4x128xf32>, vector<128x128xf32>, vector<4x128xf32> -> vector<4x128xf32>
    %c0_42 = arith.constant 0 : index
    %c0_43 = arith.constant 0 : index
    %93 = vector.load %arg7[%c0_42, %c0_43] : memref<1x128xf32, #tpu.memory_space<vmem>>, vector<1x128xf32>
    %94 = vector.broadcast %93 : vector<1x128xf32> to vector<4x128xf32>
    %95 = arith.addf %92, %94 : vector<4x128xf32>
    %cst_44 = arith.constant dense<0xFF800000> : vector<4xf32>
    %96 = vector.multi_reduction <maximumf>, %95, %cst_44 [1] : vector<4x128xf32> to vector<4xf32>
    %97 = vector.shape_cast %96 : vector<4xf32> to vector<4x1xf32>
    %98 = vector.broadcast %97 : vector<4x1xf32> to vector<4x128xf32>
    %99 = arith.subf %95, %98 : vector<4x128xf32>
    %100 = math.exp %99 : vector<4x128xf32>
    %cst_45 = arith.constant dense<0.000000e+00> : vector<4xf32>
    %101 = vector.multi_reduction <add>, %100, %cst_45 [1] : vector<4x128xf32> to vector<4xf32>
    %102 = vector.shape_cast %101 : vector<4xf32> to vector<4x1xf32>
    %103 = math.log %102 : vector<4x1xf32>
    %104 = vector.broadcast %103 : vector<4x1xf32> to vector<4x128xf32>
    %105 = arith.subf %99, %104 : vector<4x128xf32>
    %c0_46 = arith.constant 0 : index
    %c0_47 = arith.constant 0 : index
    %106 = vector.load %arg8[%c0_46, %c0_47] : memref<4x128xf32, #tpu.memory_space<vmem>>, vector<4x128xf32>
    tpu.vector_store %arg8[%c0_46, %c0_47], %105 {strides = array<i32>} : memref<4x128xf32, #tpu.memory_space<vmem>>, vector<4x128xf32>,
    return
  }
  func.func @transform_0(%arg0: i32) -> (i32, i32) {
    %c0_i32 = arith.constant 0 : i32
    %c0_i32_0 = arith.constant 0 : i32
    return %arg0, %c0_i32 : i32, i32
  }
  func.func @transform_1(%arg0: i32) -> (i32, i32) {
    %c0_i32 = arith.constant 0 : i32
    %c0_i32_0 = arith.constant 0 : i32
    %c0_i32_1 = arith.constant 0 : i32
    return %c0_i32, %c0_i32_0 : i32, i32
  }
  func.func @transform_2(%arg0: i32) -> (i32, i32) {
    %c0_i32 = arith.constant 0 : i32
    %c0_i32_0 = arith.constant 0 : i32
    %c0_i32_1 = arith.constant 0 : i32
    return %c0_i32, %c0_i32_0 : i32, i32
  }
  func.func @transform_3(%arg0: i32) -> (i32, i32) {
    %c0_i32 = arith.constant 0 : i32
    %c0_i32_0 = arith.constant 0 : i32
    %c0_i32_1 = arith.constant 0 : i32
    return %c0_i32, %c0_i32_0 : i32, i32
  }
  func.func @transform_4(%arg0: i32) -> (i32, i32) {
    %c0_i32 = arith.constant 0 : i32
    %c0_i32_0 = arith.constant 0 : i32
    %c0_i32_1 = arith.constant 0 : i32
    return %c0_i32, %c0_i32_0 : i32, i32
  }
  func.func @transform_5(%arg0: i32) -> (i32, i32) {
    %c0_i32 = arith.constant 0 : i32
    %c0_i32_0 = arith.constant 0 : i32
    %c0_i32_1 = arith.constant 0 : i32
    return %c0_i32, %c0_i32_0 : i32, i32
  }
  func.func @transform_6(%arg0: i32) -> (i32, i32) {
    %c0_i32 = arith.constant 0 : i32
    %c0_i32_0 = arith.constant 0 : i32
    %c0_i32_1 = arith.constant 0 : i32
    return %c0_i32, %c0_i32_0 : i32, i32
  }
  func.func @transform_7(%arg0: i32) -> (i32, i32) {
    %c0_i32 = arith.constant 0 : i32
    %c0_i32_0 = arith.constant 0 : i32
    return %arg0, %c0_i32 : i32, i32
  }
}

</mosaic_0001>

<bundles_post_ra>
// kernel: net_forward.1
= control target key start
LH: loop header
LB: loop body
LE: loop exit
PB: predicated region body
PF: predicated region fallthrough
CT: control target
= control target key end

     0   :  { %12 = vsyncpa [#allocation3], 0  ;;  %s1019_s0 = inlined_call_operand.hbm [shape: f32[4,752], index: 0, kind: input, shape index: {}]   ;;  %s1020_s1 = inlined_call_operand.hbm [shape: f32[512,256], index: 1, kind: input, shape index: {}]   ;;  %s1021_s2 = inlined_call_operand.vmem [shape: f32[1,256], index: 2, kind: input, shape index: {}]   ;;  %s1022_s3 = inlined_call_operand.hbm [shape: f32[256,128], index: 3, kind: input, shape index: {}]   ;;  %s1023_s4 = inlined_call_operand.vmem [shape: f32[1,128], index: 4, kind: input, shape index: {}]   ;;  %s1024_s5 = inlined_call_operand.hbm [shape: f32[128,128], index: 5, kind: input, shape index: {}]   ;;  %s1025_s6 = inlined_call_operand.vmem [shape: f32[1,128], index: 6, kind: input, shape index: {}]   ;;  %s1026_s7 = inlined_call_operand.hbm [shape: f32[4,128], index: 7, kind: output, shape index: {}]  }
   0x1   :  { %13 = vsyncpa [#allocation6], 0 }
   0x2   :  { %14 = vsyncpa [#allocation9], 0 }
   0x3   :  { %15 = vsyncpa [#allocation4], 0  ;;  %s939_s24 = smov [#allocation5]  }
   0x4   :  { %s31_s25 = sshll.u32 %s939_s24, 4  ;;  %s32_s25 = int_to_ptr.vmem [resolvable:$true] %s31_s25 }
   0x5   :  { %s839_s26 = scalar_lea.vmem %s32_s25, 16384  ;;  %p844_p1 = scmp.lt.s32.totalorder %s32_s25, %s32_s25 }
   0x6   :  { %p840_p0 = scmp.ne.s32.totalorder %s32_s25, %s839_s26  ;;  %p845_p2 = scmp.lt.s32.totalorder %s839_s26, %s839_s26 }
   0x8   :  { %p846_p3 = por %p845_p2, %p844_p1 }
   0xa   :  { %p847_p4 = pnand %p846_p3, %p840_p0 }
   0xc   :  { %850 = shalt.err (!%p847_p4)
}
   0xd   :  { %s940_s27 = smov 256   ;;  %s941_s28 = smov 16  }
   0xe   :  { %37 = dma.hbm_to_vmem [thread:$0]  %s1020_s1, 16384, %s32_s25, [#allocation6], %s940_s27, %s940_s27, %s941_s28  }
   0xf   :  { %s942_s8 = smov [#allocation2]   ;;  %s943_s10 = smov [#allocation7]  }
  0x10   :  { %s22_s9 = sshll.u32 %s942_s8, 4  ;;  %s45_s11 = sshll.u32 %s943_s10, 4  ;;  %s23_s9 = int_to_ptr.vmem [resolvable:$true] %s22_s9  ;;  %s46_s11 = int_to_ptr.vmem [resolvable:$true] %s45_s11 }
  0x11   :  { %s859_s12 = scalar_lea.vmem %s23_s9, 384  ;;  %p864_p6 = scmp.lt.s32.totalorder %s23_s9, %s23_s9 }
  0x12   :  { %p860_p5 = scmp.ne.s32.totalorder %s23_s9, %s859_s12  ;;  %p865_p7 = scmp.lt.s32.totalorder %s859_s12, %s859_s12 }
  0x14   :  { %p866_p8 = por %p865_p7, %p864_p6 }
  0x16   :  { %p867_p9 = pnand %p866_p8, %p860_p5 }
  0x18   :  { %870 = shalt.err (!%p867_p9)
}
  0x19   :  { %25 = dma.hbm_to_vmem [thread:$0]  %s1019_s0, 384, %s23_s9, [#allocation3]  }
  0x1a   :  { %s879_s15 = scalar_lea.vmem %s46_s11, 4096  ;;  %p884_p11 = scmp.lt.s32.totalorder %s46_s11, %s46_s11 }
  0x1b   :  { %p880_p10 = scmp.ne.s32.totalorder %s46_s11, %s879_s15  ;;  %p885_p12 = scmp.lt.s32.totalorder %s879_s15, %s879_s15 }
  0x1d   :  { %p886_p13 = por %p885_p12, %p884_p11 }
  0x1f   :  { %p887_p0 = pnand %p886_p13, %p880_p10 }
  0x21   :  { %890 = shalt.err (!%p887_p0)
}
  0x22   :  { %s944_s1 = smov 128   ;;  %s945_s16 = smov 8  }
  0x23   :  { %51 = dma.hbm_to_vmem [thread:$0]  %s1022_s3, 4096, %s46_s11, [#allocation6], %s944_s1, %s944_s1, %s945_s16  }
  0x24   :  { %s946_s19 = smov [#allocation8]  }
  0x25   :  { %s59_s20 = sshll.u32 %s946_s19, 4  ;;  %s60_s20 = int_to_ptr.vmem [resolvable:$true] %s59_s20 }
  0x26   :  { %s899_s21 = scalar_lea.vmem %s60_s20, 2048  ;;  %p904_p2 = scmp.lt.s32.totalorder %s60_s20, %s60_s20 }
  0x27   :  { %p900_p1 = scmp.ne.s32.totalorder %s60_s20, %s899_s21  ;;  %p905_p3 = scmp.lt.s32.totalorder %s899_s21, %s899_s21 }
  0x29   :  { %p906_p4 = por %p905_p3, %p904_p2 }
  0x2b   :  { %p907_p5 = pnand %p906_p4, %p900_p1 }
  0x2d   :  { %910 = shalt.err (!%p907_p5)
}
  0x2e   :  { %65 = dma.hbm_to_vmem [thread:$0]  %s1024_s5, 2048, %s60_s20, [#allocation9], %s944_s1, %s944_s1, %s945_s16  }
  0x2f   :  { %931 = dma.done.wait [#allocation3], 384  }
  0x30   :  { %932 = vsyncadd [#allocation3], 4294966912 }
  0x31   :  { %933 = dma.done.wait [#allocation6], 20480  }
  0x32   :  { %934 = vsyncadd [#allocation6], 4294946816 }
  0x33   :  { %935 = dma.done.wait [#allocation9], 2048  }
  0x34   :  { %936 = vsyncadd [#allocation9], 4294965248  ;;  %v80_v0 = vld [vmem:[#allocation2] sm:$0xff]  ;;  %v81_v1 = vld [vmem:[#allocation2 + $0x8] sm:$0xff]  ;;  %vm238_vm0 = vcmask 64512   ;;  %vm948_vm3 = vmmov 0  }
  0x35   :  { %v82_v2 = vld [vmem:[#allocation2 + $0x10] sm:$0xf]  ;;  %v226_v3 = vcombine.high %v80_v0, %v80_v0  ;;  %v227_v4 = vcombine.high %v81_v1, %v81_v1  ;;  %v113_v6 = vld [vmem:[#allocation5 + $0xf0] sm:$0xff]  ;;  %v112_v8 = vld [vmem:[#allocation5 + $0xe8] sm:$0xff]  ;;  %vm672_vm5 = vcmask 1043456   ;;  %s949_s25 = smov [#allocation10]  }
  0x36   :  { %236 = vrot.lane.b32.xlu1 %v82_v2, %s945_s16  ;;  %v114_v5 = vld [vmem:[#allocation5 + $0xf8] sm:$0xff]  ;;  %v177_v9 = vld [vmem:[#allocation5 + $0x2f0] sm:$0xff]  ;;  %v111_v10 = vld [vmem:[#allocation5 + $0xe0] sm:$0xff]  ;;  %s692_s26 = sshll.u32 %s949_s25, 4  ;;  %s693_s26 = int_to_ptr.vmem [resolvable:$true] %s692_s26 }
  0x37   :  { %v178_v7 = vld [vmem:[#allocation5 + $0x2f8] sm:$0xff]  ;;  %247 = vmatprep.subr.mxu0 %v114_v5  ;;  %v803_v11 = vpack.i.bf16 %v81_v1, %v226_v3  ;;  %v176_v12 = vld [vmem:[#allocation5 + $0x2e8] sm:$0xff]  ;;  %v175_v14 = vld [vmem:[#allocation5 + $0x2e0] sm:$0xff]  ;;  %v808_v17 = vpack.i.bf16 %v227_v4, %v80_v0  ;;  %p916_p7 = scmp.lt.s32.totalorder %s693_s26, %s693_s26 }
  0x38   :  { %318 = vmatprep.subr.mxu1 %v178_v7  ;;  %248 = vmatpush1.msra.mxu0 %v113_v6  ;;  %v110_v13 = vld [vmem:[#allocation5 + $0xd8] sm:$0xff]  ;;  %v109_v15 = vld [vmem:[#allocation5 + $0xd0] sm:$0xff]  ;;  %v108_v18 = vld [vmem:[#allocation5 + $0xc8] sm:$0xff] }
  0x39   :  { %319 = vmatpush1.msra.mxu1 %v177_v9  ;;  %249 = vmatprep.subr.mxu0 %v112_v8  ;;  %v174_v16 = vld [vmem:[#allocation5 + $0x2d8] sm:$0xff]  ;;  %v173_v19 = vld [vmem:[#allocation5 + $0x2d0] sm:$0xff]  ;;  %v107_v20 = vld [vmem:[#allocation5 + $0xc0] sm:$0xff] }
  0x3a   :  { %320 = vmatprep.subr.mxu1 %v176_v12  ;;  %804 = vrot.lane.b32.xlu0 %v803_v11, %s945_s16  ;;  %v172_v21 = vld [vmem:[#allocation5 + $0x2c8] sm:$0xff]  ;;  %v106_v22 = vld [vmem:[#allocation5 + $0xb8] sm:$0xff]  ;;  %v171_v23 = vld [vmem:[#allocation5 + $0x2c0] sm:$0xff] }
  0x3b   :  { %250 = vmatpush1.msra.mxu0 %v111_v10  ;;  %321 = vmatpush1.msra.mxu1 %v175_v14  ;;  %v105_v24 = vld [vmem:[#allocation5 + $0xb0] sm:$0xff]  ;;  %v170_v25 = vld [vmem:[#allocation5 + $0x2b8] sm:$0xff]  ;;  %v104_v26 = vld [vmem:[#allocation5 + $0xa8] sm:$0xff] }
  0x3c   :  { %251 = vmatprep.subr.mxu0 %v110_v13  ;;  %322 = vmatprep.subr.mxu1 %v174_v16  ;;  %v169_v27 = vld [vmem:[#allocation5 + $0x2b0] sm:$0xff]  ;;  %v103_v28 = vld [vmem:[#allocation5 + $0xa0] sm:$0xff]  ;;  %v168_v29 = vld [vmem:[#allocation5 + $0x2a8] sm:$0xff] }
  0x3d   :  { %252 = vmatpush1.msra.mxu0 %v109_v15  ;;  %323 = vmatpush1.msra.mxu1 %v173_v19  ;;  %v102_v30 = vld [vmem:[#allocation5 + $0x98] sm:$0xff]  ;;  %v167_v31 = vld [vmem:[#allocation5 + $0x2a0] sm:$0xff]  ;;  %v101_v32 = vld [vmem:[#allocation5 + $0x90] sm:$0xff] }
  0x3e   :  { %253 = vmatprep.subr.mxu0 %v108_v18  ;;  %809 = vrot.lane.b32.xlu0 %v808_v17, %s945_s16  ;;  %v166_v33 = vld [vmem:[#allocation5 + $0x298] sm:$0xff]  ;;  %v100_v34 = vld [vmem:[#allocation5 + $0x88] sm:$0xff]  ;;  %v165_v35 = vld [vmem:[#allocation5 + $0x290] sm:$0xff] }
  0x3f   :  { %254 = vmatpush1.msra.mxu0 %v107_v20  ;;  %324 = vmatprep.subr.mxu1 %v172_v21  ;;  %v99_v36 = vld [vmem:[#allocation5 + $0x80] sm:$0xff]  ;;  %v164_v37 = vld [vmem:[#allocation5 + $0x288] sm:$0xff]  ;;  %v98_v38 = vld [vmem:[#allocation5 + $0x78] sm:$0xff] }
  0x40   :  { %255 = vmatprep.subr.mxu0 %v106_v22  ;;  %325 = vmatpush1.msra.mxu1 %v171_v23  ;;  %v163_v39 = vld [vmem:[#allocation5 + $0x280] sm:$0xff]  ;;  %v97_v40 = vld [vmem:[#allocation5 + $0x70] sm:$0xff]  ;;  %v162_v41 = vld [vmem:[#allocation5 + $0x278] sm:$0xff] }
  0x41   :  { %256 = vmatpush1.msra.mxu0 %v105_v24  ;;  %326 = vmatprep.subr.mxu1 %v170_v25  ;;  %v96_v42 = vld [vmem:[#allocation5 + $0x68] sm:$0xff]  ;;  %v161_v43 = vld [vmem:[#allocation5 + $0x270] sm:$0xff]  ;;  %v95_v44 = vld [vmem:[#allocation5 + $0x60] sm:$0xff] }
  0x42   :  { %257 = vmatprep.subr.mxu0 %v104_v26  ;;  %327 = vmatpush1.msra.mxu1 %v169_v27  ;;  %v160_v45 = vld [vmem:[#allocation5 + $0x268] sm:$0xff]  ;;  %v94_v46 = vld [vmem:[#allocation5 + $0x58] sm:$0xff]  ;;  %v159_v47 = vld [vmem:[#allocation5 + $0x260] sm:$0xff] }
  0x43   :  { %258 = vmatpush1.msra.mxu0 %v103_v28  ;;  %328 = vmatprep.subr.mxu1 %v168_v29  ;;  %v93_v48 = vld [vmem:[#allocation5 + $0x50] sm:$0xff]  ;;  %v158_v49 = vld [vmem:[#allocation5 + $0x258] sm:$0xff]  ;;  %v92_v50 = vld [vmem:[#allocation5 + $0x48] sm:$0xff] }
  0x44   :  { %259 = vmatprep.subr.mxu0 %v102_v30  ;;  %329 = vmatpush1.msra.mxu1 %v167_v31  ;;  %v157_v51 = vld [vmem:[#allocation5 + $0x250] sm:$0xff]  ;;  %v91_v52 = vld [vmem:[#allocation5 + $0x40] sm:$0xff]  ;;  %v156_v53 = vld [vmem:[#allocation5 + $0x248] sm:$0xff] }
  0x45   :  { %260 = vmatpush1.msra.mxu0 %v101_v32  ;;  %330 = vmatprep.subr.mxu1 %v166_v33  ;;  %v90_v54 = vld [vmem:[#allocation5 + $0x38] sm:$0xff]  ;;  %v155_v55 = vld [vmem:[#allocation5 + $0x240] sm:$0xff]  ;;  %v89_v56 = vld [vmem:[#allocation5 + $0x30] sm:$0xff] }
  0x46   :  { %261 = vmatprep.subr.mxu0 %v100_v34  ;;  %331 = vmatpush1.msra.mxu1 %v165_v35  ;;  %v154_v57 = vld [vmem:[#allocation5 + $0x238] sm:$0xff]  ;;  %v88_v58 = vld [vmem:[#allocation5 + $0x28] sm:$0xff]  ;;  %v153_v59 = vld [vmem:[#allocation5 + $0x230] sm:$0xff] }
  0x47   :  { %262 = vmatpush1.msra.mxu0 %v99_v36  ;;  %332 = vmatprep.subr.mxu1 %v164_v37  ;;  %v87_v60 = vld [vmem:[#allocation5 + $0x20] sm:$0xff]  ;;  %v152_v61 = vld [vmem:[#allocation5 + $0x228] sm:$0xff]  ;;  %v86_v62 = vld [vmem:[#allocation5 + $0x18] sm:$0xff] }
  0x48   :  { %263 = vmatprep.subr.mxu0 %v98_v38  ;;  %333 = vmatpush1.msra.mxu1 %v163_v39  ;;  %v151_v63 = vld [vmem:[#allocation5 + $0x220] sm:$0xff]  ;;  %v85_v0 = vld [vmem:[#allocation5 + $0x10] sm:$0xff]  ;;  %v150_v1 = vld [vmem:[#allocation5 + $0x218] sm:$0xff] }
  0x49   :  { %264 = vmatpush1.msra.mxu0 %v97_v40  ;;  %334 = vmatprep.subr.mxu1 %v162_v41  ;;  %v84_v2 = vld [vmem:[#allocation5 + $0x8] sm:$0xff]  ;;  %v149_v3 = vld [vmem:[#allocation5 + $0x210] sm:$0xff]  ;;  %v83_v4 = vld [vmem:[#allocation5] sm:$0xff] }
  0x4a   :  { %265 = vmatprep.subr.mxu0 %v96_v42  ;;  %335 = vmatpush1.msra.mxu1 %v161_v43  ;;  %v148_v5 = vld [vmem:[#allocation5 + $0x208] sm:$0xff]  ;;  %v146_v6 = vld [vmem:[#allocation5 + $0x1f8] sm:$0xff]  ;;  %v147_v7 = vld [vmem:[#allocation5 + $0x200] sm:$0xff] }
  0x4b   :  { %266 = vmatpush1.msra.mxu0 %v95_v44  ;;  %336 = vmatprep.subr.mxu1 %v160_v45  ;;  %v145_v8 = vld [vmem:[#allocation5 + $0x1f0] sm:$0xff]  ;;  %v210_v9 = vld [vmem:[#allocation5 + $0x3f8] sm:$0xff]  ;;  %v144_v10 = vld [vmem:[#allocation5 + $0x1e8] sm:$0xff] }
  0x4c   :  { %267 = vmatprep.subr.mxu0 %v94_v46  ;;  %337 = vmatpush1.msra.mxu1 %v159_v47  ;;  %v209_v11 = vld [vmem:[#allocation5 + $0x3f0] sm:$0xff]  ;;  %v143_v12 = vld [vmem:[#allocation5 + $0x1e0] sm:$0xff]  ;;  %v208_v13 = vld [vmem:[#allocation5 + $0x3e8] sm:$0xff] }
  0x4d   :  { %268 = vmatpush1.msra.mxu0 %v93_v48  ;;  %338 = vmatprep.subr.mxu1 %v158_v49  ;;  %v142_v14 = vld [vmem:[#allocation5 + $0x1d8] sm:$0xff]  ;;  %v207_v15 = vld [vmem:[#allocation5 + $0x3e0] sm:$0xff]  ;;  %v141_v16 = vld [vmem:[#allocation5 + $0x1d0] sm:$0xff] }
  0x4e   :  { %269 = vmatprep.subr.mxu0 %v92_v50  ;;  %339 = vmatpush1.msra.mxu1 %v157_v51  ;;  %v206_v17 = vld [vmem:[#allocation5 + $0x3d8] sm:$0xff]  ;;  %v140_v18 = vld [vmem:[#allocation5 + $0x1c8] sm:$0xff]  ;;  %v205_v19 = vld [vmem:[#allocation5 + $0x3d0] sm:$0xff] }
  0x4f   :  { %270 = vmatpush1.msra.mxu0 %v91_v52  ;;  %340 = vmatprep.subr.mxu1 %v156_v53  ;;  %v139_v20 = vld [vmem:[#allocation5 + $0x1c0] sm:$0xff]  ;;  %v204_v21 = vld [vmem:[#allocation5 + $0x3c8] sm:$0xff]  ;;  %v138_v22 = vld [vmem:[#allocation5 + $0x1b8] sm:$0xff] }
  0x50   :  { %271 = vmatprep.subr.mxu0 %v90_v54  ;;  %341 = vmatpush1.msra.mxu1 %v155_v55  ;;  %v203_v23 = vld [vmem:[#allocation5 + $0x3c0] sm:$0xff]  ;;  %v137_v24 = vld [vmem:[#allocation5 + $0x1b0] sm:$0xff]  ;;  %v202_v25 = vld [vmem:[#allocation5 + $0x3b8] sm:$0xff] }
  0x51   :  { %272 = vmatpush1.msra.mxu0 %v89_v56  ;;  %342 = vmatprep.subr.mxu1 %v154_v57  ;;  %v136_v26 = vld [vmem:[#allocation5 + $0x1a8] sm:$0xff]  ;;  %v201_v27 = vld [vmem:[#allocation5 + $0x3b0] sm:$0xff]  ;;  %v135_v28 = vld [vmem:[#allocation5 + $0x1a0] sm:$0xff] }
  0x52   :  { %273 = vmatprep.subr.mxu0 %v88_v58  ;;  %343 = vmatpush1.msra.mxu1 %v153_v59  ;;  %v200_v29 = vld [vmem:[#allocation5 + $0x3a8] sm:$0xff]  ;;  %v134_v30 = vld [vmem:[#allocation5 + $0x198] sm:$0xff]  ;;  %v199_v31 = vld [vmem:[#allocation5 + $0x3a0] sm:$0xff] }
  0x53   :  { %274 = vmatpush1.msra.mxu0 %v87_v60  ;;  %344 = vmatprep.subr.mxu1 %v152_v61  ;;  %v133_v32 = vld [vmem:[#allocation5 + $0x190] sm:$0xff]  ;;  %v198_v33 = vld [vmem:[#allocation5 + $0x398] sm:$0xff]  ;;  %v132_v34 = vld [vmem:[#allocation5 + $0x188] sm:$0xff] }
  0x54   :  { %275 = vmatprep.subr.mxu0 %v86_v62  ;;  %345 = vmatpush1.msra.mxu1 %v151_v63  ;;  %v197_v35 = vld [vmem:[#allocation5 + $0x390] sm:$0xff]  ;;  %v131_v36 = vld [vmem:[#allocation5 + $0x180] sm:$0xff]  ;;  %v196_v37 = vld [vmem:[#allocation5 + $0x388] sm:$0xff] }
  0x55   :  { %276 = vmatpush1.msra.mxu0 %v85_v0  ;;  %346 = vmatprep.subr.mxu1 %v150_v1  ;;  %v130_v38 = vld [vmem:[#allocation5 + $0x178] sm:$0xff]  ;;  %v195_v39 = vld [vmem:[#allocation5 + $0x380] sm:$0xff]  ;;  %v129_v40 = vld [vmem:[#allocation5 + $0x170] sm:$0xff] }
  0x56   :  { %277 = vmatprep.subr.mxu0 %v84_v2  ;;  %347 = vmatpush1.msra.mxu1 %v149_v3  ;;  %v194_v41 = vld [vmem:[#allocation5 + $0x378] sm:$0xff]  ;;  %v128_v42 = vld [vmem:[#allocation5 + $0x168] sm:$0xff]  ;;  %v193_v43 = vld [vmem:[#allocation5 + $0x370] sm:$0xff] }
  0x57   :  { %278 = vmatpush1.msra.mxu0 %v83_v4  ;;  %348 = vmatprep.subr.mxu1 %v148_v5  ;;  %v127_v44 = vld [vmem:[#allocation5 + $0x160] sm:$0xff]  ;;  %v192_v45 = vld [vmem:[#allocation5 + $0x368] sm:$0xff]  ;;  %v126_v46 = vld [vmem:[#allocation5 + $0x158] sm:$0xff] }
  0x58   :  { %279 = vmatprep.subr.mxu0 %v146_v6  ;;  %349 = vmatpush1.msra.mxu1 %v147_v7  ;;  %v191_v47 = vld [vmem:[#allocation5 + $0x360] sm:$0xff]  ;;  %v125_v48 = vld [vmem:[#allocation5 + $0x150] sm:$0xff]  ;;  %v190_v49 = vld [vmem:[#allocation5 + $0x358] sm:$0xff] }
  0x59   :  { %280 = vmatpush2.msra.mxu0 %v145_v8  ;;  %350 = vmatprep.subr.mxu1 %v210_v9  ;;  %v124_v50 = vld [vmem:[#allocation5 + $0x148] sm:$0xff]  ;;  %v189_v51 = vld [vmem:[#allocation5 + $0x350] sm:$0xff]  ;;  %v123_v52 = vld [vmem:[#allocation5 + $0x140] sm:$0xff] }
  0x5a   :  { %281 = vmatprep.subr.mxu0 %v144_v10  ;;  %351 = vmatpush2.msra.mxu1 %v209_v11  ;;  %v188_v53 = vld [vmem:[#allocation5 + $0x348] sm:$0xff]  ;;  %v122_v54 = vld [vmem:[#allocation5 + $0x138] sm:$0xff]  ;;  %v187_v55 = vld [vmem:[#allocation5 + $0x340] sm:$0xff] }
  0x5b   :  { %282 = vmatpush2.msra.mxu0 %v143_v12  ;;  %352 = vmatprep.subr.mxu1 %v208_v13  ;;  %v121_v56 = vld [vmem:[#allocation5 + $0x130] sm:$0xff]  ;;  %v186_v57 = vld [vmem:[#allocation5 + $0x338] sm:$0xff]  ;;  %v120_v58 = vld [vmem:[#allocation5 + $0x128] sm:$0xff] }
  0x5c   :  { %283 = vmatprep.subr.mxu0 %v142_v14  ;;  %353 = vmatpush2.msra.mxu1 %v207_v15  ;;  %v185_v59 = vld [vmem:[#allocation5 + $0x330] sm:$0xff]  ;;  %v119_v60 = vld [vmem:[#allocation5 + $0x120] sm:$0xff]  ;;  %v184_v61 = vld [vmem:[#allocation5 + $0x328] sm:$0xff] }
  0x5d   :  { %284 = vmatpush2.msra.mxu0 %v141_v16  ;;  %354 = vmatprep.subr.mxu1 %v206_v17  ;;  %v118_v62 = vld [vmem:[#allocation5 + $0x118] sm:$0xff]  ;;  %v183_v63 = vld [vmem:[#allocation5 + $0x320] sm:$0xff]  ;;  %v117_v0 = vld [vmem:[#allocation5 + $0x110] sm:$0xff] }
  0x5e   :  { %285 = vmatprep.subr.mxu0 %v140_v18  ;;  %355 = vmatpush2.msra.mxu1 %v205_v19  ;;  %v182_v1 = vld [vmem:[#allocation5 + $0x318] sm:$0xff]  ;;  %v116_v2 = vld [vmem:[#allocation5 + $0x108] sm:$0xff]  ;;  %v181_v3 = vld [vmem:[#allocation5 + $0x310] sm:$0xff] }
  0x5f   :  { %286 = vmatpush2.msra.mxu0 %v139_v20  ;;  %356 = vmatprep.subr.mxu1 %v204_v21  ;;  %v115_v4 = vld [vmem:[#allocation5 + $0x100] sm:$0xff]  ;;  %v180_v5 = vld [vmem:[#allocation5 + $0x308] sm:$0xff]  ;;  %v474_v18 = vld [vmem:[#allocation7 + $0xf8] sm:$0xff] }
  0x60   :  { %287 = vmatprep.subr.mxu0 %v138_v22  ;;  %357 = vmatpush2.msra.mxu1 %v203_v23  ;;  %v179_v6 = vld [vmem:[#allocation5 + $0x300] sm:$0xff]  ;;  %v458_v19 = vld [vmem:[#allocation7 + $0x78] sm:$0xff]  ;;  %v473_v20 = vld [vmem:[#allocation7 + $0xf0] sm:$0xff] }
  0x61   :  { %288 = vmatpush2.msra.mxu0 %v137_v24  ;;  %358 = vmatprep.subr.mxu1 %v202_v25  ;;  %v457_v21 = vld [vmem:[#allocation7 + $0x70] sm:$0xff]  ;;  %v472_v22 = vld [vmem:[#allocation7 + $0xe8] sm:$0xff]  ;;  %v471_v24 = vld [vmem:[#allocation7 + $0xe0] sm:$0xff] }
  0x62   :  { %289 = vmatprep.subr.mxu0 %v136_v26  ;;  %359 = vmatpush2.msra.mxu1 %v201_v27  ;;  %v456_v23 = vld [vmem:[#allocation7 + $0x68] sm:$0xff]  ;;  %v455_v25 = vld [vmem:[#allocation7 + $0x60] sm:$0xff]  ;;  %v470_v26 = vld [vmem:[#allocation7 + $0xd8] sm:$0xff] }
  0x63   :  { %290 = vmatpush2.msra.mxu0 %v135_v28  ;;  %360 = vmatprep.subr.mxu1 %v200_v29  ;;  %v454_v27 = vld [vmem:[#allocation7 + $0x58] sm:$0xff]  ;;  %v469_v28 = vld [vmem:[#allocation7 + $0xd0] sm:$0xff] }
  0x64   :  { %291 = vmatprep.subr.mxu0 %v134_v30  ;;  %361 = vmatpush2.msra.mxu1 %v199_v31  ;;  %v453_v29 = vld [vmem:[#allocation7 + $0x50] sm:$0xff]  ;;  %v468_v30 = vld [vmem:[#allocation7 + $0xc8] sm:$0xff] }
  0x65   :  { %292 = vmatpush2.msra.mxu0 %v133_v32  ;;  %362 = vmatprep.subr.mxu1 %v198_v33  ;;  %v452_v31 = vld [vmem:[#allocation7 + $0x48] sm:$0xff]  ;;  %v467_v32 = vld [vmem:[#allocation7 + $0xc0] sm:$0xff] }
  0x66   :  { %293 = vmatprep.subr.mxu0 %v132_v34  ;;  %363 = vmatpush2.msra.mxu1 %v197_v35  ;;  %v451_v33 = vld [vmem:[#allocation7 + $0x40] sm:$0xff]  ;;  %v466_v34 = vld [vmem:[#allocation7 + $0xb8] sm:$0xff] }
  0x67   :  { %294 = vmatpush2.msra.mxu0 %v131_v36  ;;  %364 = vmatprep.subr.mxu1 %v196_v37  ;;  %v450_v35 = vld [vmem:[#allocation7 + $0x38] sm:$0xff]  ;;  %v465_v36 = vld [vmem:[#allocation7 + $0xb0] sm:$0xff] }
  0x68   :  { %295 = vmatprep.subr.mxu0 %v130_v38  ;;  %365 = vmatpush2.msra.mxu1 %v195_v39  ;;  %v449_v37 = vld [vmem:[#allocation7 + $0x30] sm:$0xff]  ;;  %v464_v38 = vld [vmem:[#allocation7 + $0xa8] sm:$0xff] }
  0x69   :  { %296 = vmatpush2.msra.mxu0 %v129_v40  ;;  %366 = vmatprep.subr.mxu1 %v194_v41  ;;  %v448_v39 = vld [vmem:[#allocation7 + $0x28] sm:$0xff]  ;;  %v463_v40 = vld [vmem:[#allocation7 + $0xa0] sm:$0xff] }
  0x6a   :  { %297 = vmatprep.subr.mxu0 %v128_v42  ;;  %367 = vmatpush2.msra.mxu1 %v193_v43  ;;  %v447_v41 = vld [vmem:[#allocation7 + $0x20] sm:$0xff]  ;;  %v462_v42 = vld [vmem:[#allocation7 + $0x98] sm:$0xff] }
  0x6b   :  { %298 = vmatpush2.msra.mxu0 %v127_v44  ;;  %368 = vmatprep.subr.mxu1 %v192_v45  ;;  %v446_v43 = vld [vmem:[#allocation7 + $0x18] sm:$0xff]  ;;  %v461_v44 = vld [vmem:[#allocation7 + $0x90] sm:$0xff] }
  0x6c   :  { %299 = vmatprep.subr.mxu0 %v126_v46  ;;  %369 = vmatpush2.msra.mxu1 %v191_v47  ;;  %v445_v45 = vld [vmem:[#allocation7 + $0x10] sm:$0xff]  ;;  %v460_v46 = vld [vmem:[#allocation7 + $0x88] sm:$0xff] }
  0x6d   :  { %300 = vmatpush2.msra.mxu0 %v125_v48  ;;  %370 = vmatprep.subr.mxu1 %v190_v49  ;;  %v444_v47 = vld [vmem:[#allocation7 + $0x8] sm:$0xff]  ;;  %v459_v48 = vld [vmem:[#allocation7 + $0x80] sm:$0xff] }
  0x6e   :  { %301 = vmatprep.subr.mxu0 %v124_v50  ;;  %371 = vmatpush2.msra.mxu1 %v189_v51  ;;  %v443_v49 = vld [vmem:[#allocation7] sm:$0xff]  ;;  %v213_v50 = vlaneseq }
  0x6f   :  { %302 = vmatpush2.msra.mxu0 %v123_v52  ;;  %372 = vmatprep.subr.mxu1 %v188_v53  ;;  %v211_v53 = vld [vmem:[%s1021_s2] sm:$0x3] }
  0x70   :  { %303 = vmatprep.subr.mxu0 %v122_v54  ;;  %373 = vmatpush2.msra.mxu1 %v187_v55  ;;  %v214_v51 = vshrl.u32 %v213_v50, 7 }
  0x71   :  { %304 = vmatpush2.msra.mxu0 %v121_v56  ;;  %374 = vmatprep.subr.mxu1 %v186_v57 }
  0x72   :  { %305 = vmatprep.subr.mxu0 %v120_v58  ;;  %375 = vmatpush2.msra.mxu1 %v185_v59  ;;  %v215_v52 = vsub.s32 0, %v214_v51  ;;  %v219_v54 = vsub.s32 1, %v214_v51  ;;  %v947_v51 = vmov 0.0  }
  0x73   :  { %306 = vmatpush2.msra.mxu0 %v119_v60  ;;  %376 = vmatprep.subr.mxu1 %v184_v61 }
  0x74   :  { %307 = vmatprep.subr.mxu0 %v118_v62  ;;  %377 = vmatpush2.msra.mxu1 %v183_v63  ;;  %v216_v55 = vrot.slane %v211_v53, %v215_v52  ;;  %v220_v56 = vrot.slane %v211_v53, %v219_v54  ;;  %v594_v52 = vld [vmem:[#allocation8 + $0x78] sm:$0xff]  ;;  %v593_v53 = vld [vmem:[#allocation8 + $0x70] sm:$0xff]  ;;  %v592_v54 = vld [vmem:[#allocation8 + $0x68] sm:$0xff] }
  0x75   :  { %308 = vmatpush2.msra.mxu0 %v117_v0  ;;  %378 = vmatprep.subr.mxu1 %v182_v1 }
  0x76   :  { %309 = vmatprep.subr.mxu0 %v116_v2  ;;  %379 = vmatpush2.msra.mxu1 %v181_v3 }
  0x77   :  { %310 = vmatpush2.msra.mxu0 %v115_v4  ;;  %380 = vmatprep.subr.mxu1 %v180_v5 }
  0x78   :  { %381 = vmatpush2.msra.mxu1 %v179_v6  ;;  %705 = vmatprep.subr.mxu0 %v474_v18 }
  0x79   :  { %757 = vmatprep.subr.mxu1 %v947_v51 }
  0xa8   :  { %v237_v12 = vpop.permute.xlu1 %236 }
  0xac   :  { %v805_v7 = vpop.permute.xlu0 %804 }
  0xad   :  { %v807_v8 = vunpack.i.h.bf16 %v805_v7  ;;  %v806_v9 = vunpack.i.l.bf16 %v805_v7 }
  0xaf   :  { %v240_v10 = vsel %vm238_vm0, %v806_v9, %v807_v8 }
  0xb0   :  { %v810_v11 = vpop.permute.xlu0 %809  ;;  %311 = vmatprep.mubr.f32.mxu0 %v240_v10 }
  0xb1   :  { %v812_v13 = vunpack.i.h.bf16 %v810_v11  ;;  %v811_v14 = vunpack.i.l.bf16 %v810_v11 }
  0xb3   :  { %v239_v15 = vsel %vm238_vm0, %v811_v14, %v806_v9  ;;  %v242_v16 = vsel %vm238_vm0, %v812_v13, %v237_v12  ;;  %v241_v17 = vsel %vm238_vm0, %v807_v8, %v812_v13 }
  0xb4   :  { %312 = vmatmul.mubr.f32.vlgmr.msra.gmra.mxu0 %v239_v15  ;;  %382 = vmatprep.mubr.f32.mxu1 %v242_v16 }
  0xb5   :  { %383 = vmatmul.mubr.f32.vlgmr.msra.gmra.mxu1 %v241_v17  ;;  %706 = vmatpush3.msra.mxu0 %v458_v19 }
  0xb6   :  { %707 = vmatprep.subr.mxu0 %v473_v20  ;;  %758 = vmatpush3.msra.mxu1 %v594_v52 }
  0xb7   :  { %708 = vmatpush3.msra.mxu0 %v457_v21  ;;  %759 = vmatprep.subr.mxu1 %v947_v51 }
  0xb8   :  { %709 = vmatprep.subr.mxu0 %v472_v22  ;;  %760 = vmatpush3.msra.mxu1 %v593_v53 }
  0xb9   :  { %710 = vmatpush3.msra.mxu0 %v456_v23  ;;  %761 = vmatprep.subr.mxu1 %v947_v51 }
  0xba   :  { %711 = vmatprep.subr.mxu0 %v471_v24  ;;  %762 = vmatpush3.msra.mxu1 %v592_v54 }
  0xbb   :  { %712 = vmatpush3.msra.mxu0 %v455_v25  ;;  %763 = vmatprep.subr.mxu1 %v947_v51 }
  0xbc   :  { %713 = vmatprep.subr.mxu0 %v470_v26  ;;  %789 = vmatprep.mubr.msk.f32.mxu1 %vm948_vm3, %v947_v51 }
  0xbd   :  { %714 = vmatpush3.msra.mxu0 %v454_v27 }
  0xbe   :  { %715 = vmatprep.subr.mxu0 %v469_v28 }
  0xbf   :  { %716 = vmatpush3.msra.mxu0 %v453_v29 }
  0xc0   :  { %717 = vmatprep.subr.mxu0 %v468_v30 }
  0xc1   :  { %718 = vmatpush3.msra.mxu0 %v452_v31 }
  0xc2   :  { %719 = vmatprep.subr.mxu0 %v467_v32 }
  0xc3   :  { %720 = vmatpush3.msra.mxu0 %v451_v33 }
  0xc4   :  { %721 = vmatprep.subr.mxu0 %v466_v34 }
  0xc5   :  { %722 = vmatpush3.msra.mxu0 %v450_v35 }
  0xc6   :  { %723 = vmatprep.subr.mxu0 %v465_v36 }
  0xc7   :  { %724 = vmatpush3.msra.mxu0 %v449_v37 }
  0xc8   :  { %725 = vmatprep.subr.mxu0 %v464_v38 }
  0xc9   :  { %726 = vmatpush3.msra.mxu0 %v448_v39 }
  0xca   :  { %727 = vmatprep.subr.mxu0 %v463_v40 }
  0xcb   :  { %728 = vmatpush3.msra.mxu0 %v447_v41 }
  0xcc   :  { %729 = vmatprep.subr.mxu0 %v462_v42 }
  0xcd   :  { %730 = vmatpush3.msra.mxu0 %v446_v43 }
  0xce   :  { %731 = vmatprep.subr.mxu0 %v461_v44 }
  0xcf   :  { %732 = vmatpush3.msra.mxu0 %v445_v45 }
  0xd0   :  { %733 = vmatprep.subr.mxu0 %v460_v46 }
  0xd1   :  { %734 = vmatpush3.msra.mxu0 %v444_v47 }
  0xd2   :  { %735 = vmatprep.subr.mxu0 %v459_v48 }
  0xd3   :  { %736 = vmatpush3.msra.mxu0 %v443_v49 }
 0x174   :  { %v313_v57 = vpop.f32.mrf.mxu0 }
 0x175   :  { %v314_v58 = vadd.f32 %v313_v57, %v216_v55  ;;  %v384_v59 = vpop.f32.mrf.mxu1  ;;  %v591_v55 = vld [vmem:[#allocation8 + $0x60] sm:$0xff]  ;;  %v589_v57 = vld [vmem:[#allocation8 + $0x50] sm:$0xff] }
 0x176   :  { %v315_v60 = vpop.f32.mrf.mxu0  ;;  %764 = vmatpush3.msra.mxu1 %v591_v55 }
 0x177   :  { %v385_v61 = vadd.f32 %v384_v59, %v314_v58  ;;  %v316_v62 = vadd.f32 %v315_v60, %v220_v56  ;;  %v386_v63 = vpop.f32.mrf.mxu1  ;;  %765 = vmatprep.subr.mxu1 %v947_v51  ;;  %v590_v56 = vld [vmem:[#allocation8 + $0x58] sm:$0xff]  ;;  %v588_v58 = vld [vmem:[#allocation8 + $0x48] sm:$0xff]  ;;  %v587_v59 = vld [vmem:[#allocation8 + $0x40] sm:$0xff] }
 0x178   :  { %766 = vmatpush3.msra.mxu1 %v590_v56  ;;  %v586_v60 = vld [vmem:[#allocation8 + $0x38] sm:$0xff] }
 0x179   :  { %v391_v0 = vmul.f32 0.70710677, %v385_v61  ;;  %v387_v1 = vadd.f32 %v386_v63, %v316_v62  ;;  %v389_v48 = vmul.f32 0.5, %v385_v61  ;;  %767 = vmatprep.subr.mxu1 %v947_v51  ;;  %v585_v61 = vld [vmem:[#allocation8 + $0x30] sm:$0xff]  ;;  %v584_v62 = vld [vmem:[#allocation8 + $0x28] sm:$0xff]  ;;  %v583_v63 = vld [vmem:[#allocation8 + $0x20] sm:$0xff] }
 0x17a   :  { %768 = vmatpush3.msra.mxu1 %v589_v57 }
 0x17b   :  { %v393_v2 = vand.u32 2147483647, %v391_v0  ;;  %v392_v3 = vmul.f32 0.70710677, %v387_v1  ;;  %vm433_vm1 = vcmp.lt.f32.partialorder %v391_v0, 0.0  ;;  %v390_v46 = vmul.f32 0.5, %v387_v1  ;;  %769 = vmatprep.subr.mxu1 %v947_v51 }
 0x17c   :  { %770 = vmatpush3.msra.mxu1 %v588_v58  ;;  %v582_v0 = vld [vmem:[#allocation8 + $0x18] sm:$0xff]  ;;  %v581_v1 = vld [vmem:[#allocation8 + $0x10] sm:$0xff] }
 0x17d   :  { %v395_v4 = vmul.f32 0.3275911, %v393_v2  ;;  %v394_v5 = vand.u32 2147483647, %v392_v3  ;;  %v421_v9 = vsub.f32 0.0, %v393_v2  ;;  %vm434_vm2 = vcmp.lt.f32.partialorder %v392_v3, 0.0  ;;  %771 = vmatprep.subr.mxu1 %v947_v51 }
 0x17e   :  { %772 = vmatpush3.msra.mxu1 %v587_v59  ;;  %v579_v3 = vld [vmem:[#allocation8] sm:$0xff] }
 0x17f   :  { %v397_v6 = vadd.f32 1.0, %v395_v4  ;;  %v396_v7 = vmul.f32 0.3275911, %v394_v5  ;;  %v422_v10 = vsub.f32 0.0, %v394_v5  ;;  %v423_v11 = vmul.f32 %v421_v9, %v393_v2  ;;  %773 = vmatprep.subr.mxu1 %v947_v51  ;;  %v580_v2 = vld [vmem:[#allocation8 + $0x8] sm:$0xff] }
 0x180   :  { %774 = vmatpush3.msra.mxu1 %v586_v60 }
 0x181   :  { %815 = vrcp.f32 %v397_v6  ;;  %v398_v8 = vadd.f32 1.0, %v396_v7  ;;  %v424_v13 = vmul.f32 %v422_v10, %v394_v5  ;;  %v425_v15 = vmul.f32 1.442695, %v423_v11  ;;  %775 = vmatprep.subr.mxu1 %v947_v51  ;;  %v703_v5 = vld [vmem:[%s1023_s4] ss:$0 sm:$0xff] }
 0x182   :  { %776 = vmatpush3.msra.mxu1 %v585_v61 }
 0x183   :  { %817 = vrcp.f32 %v398_v8  ;;  %v427_v18 = vmul.f32 1.442695, %v424_v13  ;;  %777 = vmatprep.subr.mxu1 %v947_v51 }
 0x184   :  { %819 = vpow2.f32 %v425_v15  ;;  %778 = vmatpush3.msra.mxu1 %v584_v62 }
 0x185   :  { %821 = vpow2.f32 %v427_v18  ;;  %779 = vmatprep.subr.mxu1 %v947_v51 }
 0x186   :  { %780 = vmatpush3.msra.mxu1 %v583_v63 }
 0x187   :  { %781 = vmatprep.subr.mxu1 %v947_v51 }
 0x188   :  { %782 = vmatpush3.msra.mxu1 %v582_v0 }
 0x189   :  { %783 = vmatprep.subr.mxu1 %v947_v51 }
 0x18a   :  { %784 = vmatpush3.msra.mxu1 %v581_v1 }
 0x18b   :  { %785 = vmatprep.subr.mxu1 %v947_v51 }
 0x18c   :  { %786 = vmatpush3.msra.mxu1 %v580_v2 }
 0x18d   :  { %787 = vmatprep.subr.mxu1 %v947_v51 }
 0x18e   :  { %v816_v12 = vpop.eup %815  ;;  %788 = vmatpush3.msra.mxu1 %v579_v3 }
 0x18f   :  { %v403_v14 = vmul.f32 1.0614054, %v816_v12 }
 0x190   :  { %v818_v16 = vpop.eup %817 }
 0x191   :  { %v405_v17 = vadd.f32 -1.4531521, %v403_v14  ;;  %v404_v19 = vmul.f32 1.0614054, %v818_v16  ;;  %v820_v33 = vpop.eup %819 }
 0x192   :  { %v822_v37 = vpop.eup %821 }
 0x193   :  { %v407_v20 = vmul.f32 %v816_v12, %v405_v17  ;;  %v406_v21 = vadd.f32 -1.4531521, %v404_v19 }
 0x195   :  { %v409_v22 = vadd.f32 1.4214138, %v407_v20  ;;  %v408_v23 = vmul.f32 %v818_v16, %v406_v21 }
 0x197   :  { %v411_v24 = vmul.f32 %v816_v12, %v409_v22  ;;  %v410_v25 = vadd.f32 1.4214138, %v408_v23 }
 0x199   :  { %v413_v26 = vadd.f32 -0.28449672, %v411_v24  ;;  %v412_v27 = vmul.f32 %v818_v16, %v410_v25 }
 0x19b   :  { %v415_v28 = vmul.f32 %v816_v12, %v413_v26  ;;  %v414_v29 = vadd.f32 -0.28449672, %v412_v27 }
 0x19d   :  { %v417_v30 = vadd.f32 0.2548296, %v415_v28  ;;  %v416_v31 = vmul.f32 %v818_v16, %v414_v29 }
 0x19f   :  { %v419_v32 = vmul.f32 %v816_v12, %v417_v30  ;;  %v418_v34 = vadd.f32 0.2548296, %v416_v31 }
 0x1a1   :  { %v429_v35 = vmul.f32 %v820_v33, %v419_v32  ;;  %v420_v36 = vmul.f32 %v818_v16, %v418_v34  ;;  %v704_v34 = vld [vmem:[%s1025_s6] ss:$0 sm:$0xff]  ;;  %s911_s6 = scalar_lea.vmem %s693_s26, 64 }
 0x1a2   :  { %p912_p6 = scmp.ne.s32.totalorder %s693_s26, %s911_s6  ;;  %p917_p8 = scmp.lt.s32.totalorder %s911_s6, %s911_s6 }
 0x1a3   :  { %v431_v38 = vsub.f32 1.0, %v429_v35  ;;  %v430_v39 = vmul.f32 %v822_v37, %v420_v36 }
 0x1a4   :  { %p918_p9 = por %p917_p8, %p916_p7 }
 0x1a5   :  { %v435_v40 = vsub.f32 0.0, %v431_v38  ;;  %v432_v41 = vsub.f32 1.0, %v430_v39 }
 0x1a6   :  { %p919_p10 = pnand %p918_p9, %p912_p6 }
 0x1a7   :  { %v437_v42 = vsel %vm433_vm1, %v435_v40, %v431_v38  ;;  %v436_v43 = vsub.f32 0.0, %v432_v41 }
 0x1a8   :  { %v439_v44 = vadd.f32 1.0, %v437_v42 }
 0x1a9   :  { %v438_v45 = vsel %vm434_vm2, %v436_v43, %v432_v41 }
 0x1aa   :  { %v440_v47 = vadd.f32 1.0, %v438_v45  ;;  %v441_v50 = vmul.f32 %v439_v44, %v389_v48 }
 0x1ac   :  { %v442_v49 = vmul.f32 %v440_v47, %v390_v46 }
 0x1ae   :  { %546 = vmatprep.mubr.f32.mxu0 %v442_v49 }
 0x1af   :  { %547 = vmatmul.mubr.f32.vlgmr.msra.gmra.mxu0 %v441_v50 }
 0x26f   :  { %v737_v4 = vpop.f32.mrf.mxu0 }
 0x271   :  { %v738_v6 = vpop.f32.mrf.mxu0 }
 0x272   :  { %v739_v7 = vadd.f32 %v738_v6, %v737_v4 }
 0x274   :  { %v549_v8 = vadd.f32 %v739_v7, %v703_v5 }
 0x276   :  { %v553_v9 = vmul.f32 0.70710677, %v549_v8  ;;  %v552_v31 = vmul.f32 0.5, %v549_v8 }
 0x278   :  { %v554_v10 = vand.u32 2147483647, %v553_v9  ;;  %vm574_vm4 = vcmp.lt.f32.partialorder %v553_v9, 0.0 }
 0x27a   :  { %v555_v11 = vmul.f32 0.3275911, %v554_v10  ;;  %v568_v13 = vsub.f32 0.0, %v554_v10 }
 0x27c   :  { %v556_v12 = vadd.f32 1.0, %v555_v11  ;;  %v569_v14 = vmul.f32 %v568_v13, %v554_v10 }
 0x27e   :  { %823 = vrcp.f32 %v556_v12  ;;  %v570_v17 = vmul.f32 1.442695, %v569_v14 }
 0x280   :  { %825 = vpow2.f32 %v570_v17 }
 0x28b   :  { %v824_v15 = vpop.eup %823 }
 0x28c   :  { %v559_v16 = vmul.f32 1.0614054, %v824_v15 }
 0x28d   :  { %v826_v26 = vpop.eup %825 }
 0x28e   :  { %v560_v18 = vadd.f32 -1.4531521, %v559_v16 }
 0x290   :  { %v561_v19 = vmul.f32 %v824_v15, %v560_v18 }
 0x292   :  { %v562_v20 = vadd.f32 1.4214138, %v561_v19 }
 0x294   :  { %v563_v21 = vmul.f32 %v824_v15, %v562_v20 }
 0x296   :  { %v564_v22 = vadd.f32 -0.28449672, %v563_v21 }
 0x298   :  { %v565_v23 = vmul.f32 %v824_v15, %v564_v22 }
 0x29a   :  { %v566_v24 = vadd.f32 0.2548296, %v565_v23 }
 0x29c   :  { %v567_v25 = vmul.f32 %v824_v15, %v566_v24 }
 0x29e   :  { %v572_v27 = vmul.f32 %v826_v26, %v567_v25 }
 0x2a0   :  { %v573_v28 = vsub.f32 1.0, %v572_v27 }
 0x2a2   :  { %v575_v29 = vsub.f32 0.0, %v573_v28 }
 0x2a4   :  { %v576_v30 = vsel %vm574_vm4, %v575_v29, %v573_v28 }
 0x2a5   :  { %v577_v32 = vadd.f32 1.0, %v576_v30 }
 0x2a7   :  { %v578_v33 = vmul.f32 %v577_v32, %v552_v31 }
 0x2a9   :  { %790 = vmatmul.mubr.f32.vlgmr.msra.gmra.mxu1 %v578_v33 }
 0x369   :  { %v668_v35 = vpop.f32.mrf.mxu1 }
 0x36a   :  { %v669_v36 = vadd.f32 %v704_v34, %v668_v35 }
 0x36b   :  { %v791_v37 = vpop.f32.mrf.mxu1 }
 0x36c   :  { %v673_v38 = vsel %vm672_vm5, %v669_v36, -inf }
 0x36d   :  { %674 = vmax.xlane.f32.xlu1 %v673_v38 }
 0x3f6   :  { %v675_v39 = vpop.xlane.xlu1 %674 }
 0x3f7   :  { %v676_v40 = vsub.f32 %v669_v36, %v675_v39 }
 0x3f9   :  { %v677_v41 = vmul.f32 1.442695, %v676_v40 }
 0x3fb   :  { %827 = vpow2.f32 %v677_v41 }
 0x408   :  { %v828_v42 = vpop.eup %827 }
 0x409   :  { %v679_v43 = vsel %vm672_vm5, %v828_v42, 0.0 }
 0x40a   :  { %680 = vadd.xlane.f32.xlu0 %v679_v43 }
 0x493   :  { %v681_v44 = vpop.xlane.xlu0 %680 }
 0x494   :  { %829 = vlog2.f32 %v681_v44 }
 0x4a1   :  { %v830_v45 = vpop.eup %829 }
 0x4a2   :  { %v683_v46 = vmul.f32 0.6931472, %v830_v45 }
 0x4a4   :  { %v684_v47 = vsub.f32 %v676_v40, %v683_v46 }
 0x4a6   :  { %685 = vst [vmem:[#allocation10] sm:$0xf] %v684_v47 }
 0x4a7   :  { %922 = shalt.err (!%p919_p10)
}
 0x4a8   :  { %695 = dma.vmem_to_hbm [thread:$0]  %s693_s26, 64, %s1026_s7, [#allocation4]  }
 0x4a9   :  { %937 = dma.done.wait [#allocation4], 64  }
 0x4aa   :  { %938 = vsyncadd [#allocation4], 4294967232 }
 0x4ab   :  { %699 = vsyncpa [#allocation3], 1 }
 0x4ac   :  { %700 = vsyncpa [#allocation6], 1 }
 0x4ad   :  { %701 = vsyncpa [#allocation9], 1 }
 0x4ae   :  { %702 = vsyncpa [#allocation4], 1 }

</bundles_post_ra>
